<compile_context>
chip_gen: v7x
topology: tpu7x:2x2x1
jax: 0.10.0
libtpu: 0.0.40
codegen_flags: <defaults>
</compile_context>

<pallas_src>
import jax
import jax.numpy as jnp
from jax.experimental import pallas as pl
from jax.experimental.pallas import tpu as pltpu


def _round_up(v, m):
    return -(-v // m) * m


def _block_kernel(x_ref, w_ref, c_ref, o_ref):
    x = x_ref[...]                                         # (tm, D) f32 row tile
    # fn == Linear(dim, dim): MXU matmul in w_ref.dtype (bf16 by default),
    # f32 accumulation.  g/b/fn-bias/scale are pre-folded into w_ref / c_ref.
    y = jnp.dot(x.astype(w_ref.dtype), w_ref[...],
                preferred_element_type=jnp.float32)
    o_ref[...] = (y + c_ref[...] + x).astype(o_ref.dtype)  # folded bias + residual


def pre_affine_post_layer_scale(
    x,
    params,
    *,
    block_rows=2048,
    vmem_budget_bytes=12 * 1024 * 1024,   # stays under v5e's 16 MiB default scoped VMEM
    matmul_dtype=jnp.bfloat16,            # jnp.float32 for a high-precision mode
):
    """x: (N, S, D) float32 -> (N, S, D) float32."""
    N, S, D = x.shape
    M = N * S
    x2d = x.reshape(M, D)                 # feature dim D on the 128-lane axis

    # ---- Fold affine + fn-bias + layer-scale into one weight / bias (hoisted, f32).
    f32 = jnp.float32
    w = params["w"].astype(f32)                             # (D_in, D_out)
    g = params["g"].reshape(D, 1).astype(f32)
    b = params["b"].reshape(1, D).astype(f32)
    bf = params["bf"].reshape(1, D).astype(f32)
    scale = params["scale"].reshape(1, D).astype(f32)
    w_fused = ((g * w) * scale).astype(matmul_dtype)        # diag(g) @ W * scale
    c_fused = (jnp.dot(b, w, precision=jax.lax.Precision.HIGHEST) + bf) * scale

    # ---- Row-tile sizing against the VMEM budget (x2 buffers for pipelining).
    w_bytes = 2 * D * D * jnp.dtype(matmul_dtype).itemsize
    c_bytes = 2 * D * 4
    row_bytes = 4 * D * 4                                   # x + out, double-buffered
    if M < 8:
        tm = M                                              # block == full array dim
    else:
        tm_budget = (vmem_budget_bytes - w_bytes - c_bytes) // row_bytes
        tm = max(8, min(block_rows, tm_budget))
        tm = min(tm, _round_up(M, 8))
        if M >= 16:
            # >= 2 grid steps so the "parallel" axis can split across v7x's 2 TCs.
            tm = min(tm, _round_up(pl.cdiv(M, 2), 8))
        tm = max(8, (tm // 8) * 8)
    grid_m = pl.cdiv(M, tm)

    need_bytes = w_bytes + c_bytes + tm * row_bytes
    vmem_limit = int(min(max(1.5 * need_bytes + (4 << 20), 16 << 20), 40 << 20))

    out2d = pl.pallas_call(
        _block_kernel,
        out_shape=jax.ShapeDtypeStruct((M, D), x.dtype),
        grid=(grid_m,),
        in_specs=[
            pl.BlockSpec((tm, D), lambda i: (i, 0)),   # x rows (ragged last block masked)
            pl.BlockSpec((D, D), lambda i: (0, 0)),    # fused weight, resident across steps
            pl.BlockSpec((1, D), lambda i: (0, 0)),    # fused bias
        ],
        out_specs=pl.BlockSpec((tm, D), lambda i: (i, 0)),
        compiler_params=pltpu.CompilerParams(
            dimension_semantics=("parallel",),
            vmem_limit_bytes=vmem_limit,
        ),
    )(x2d, w_fused, c_fused)

    return out2d.reshape(N, S, D)


def init_params(key, dim, depth):
    """Shapes match the PyTorch module; values are 'trained-like' so the test
    exercises the full math path (module init is g=1, b=0, scale=init_eps)."""
    if depth <= 18:
        init_eps = 0.1
    elif depth <= 24:
        init_eps = 1e-5
    else:
        init_eps = 1e-6
    kg, kb, kw, kbf = jax.random.split(key, 4)
    return {
        "g": 1.0 + 0.05 * jax.random.normal(kg, (1, 1, dim), jnp.float32),
        "b": 0.02 * jax.random.normal(kb, (1, 1, dim), jnp.float32),
        # fn == Linear(dim, dim); weight stored pre-transposed as (D_in, D_out).
        "w": (1.0 / dim ** 0.5) * jax.random.normal(kw, (dim, dim), jnp.float32),
        "bf": 0.02 * jax.random.normal(kbf, (dim,), jnp.float32),
        "scale": jnp.full((1, 1, dim), init_eps, jnp.float32),
    }


def reference(x, params):
    """Pure-JAX f32 reference: fn(affine(x)) * scale + x."""
    xa = x * params["g"] + params["b"]
    y = jnp.einsum("nsd,de->nse", xa, params["w"],
                   precision=jax.lax.Precision.HIGHEST) + params["bf"].reshape(1, 1, -1)
    return y * params["scale"] + x


if __name__ == "__main__":
    dim, depth = 128, 12        # depth <= 18 -> init_eps = 0.1; D multiple of 128
    N, S = 2, 16

    key = jax.random.PRNGKey(0)
    kx, kp = jax.random.split(key)
    x = jax.random.normal(kx, (N, S, dim), dtype=jnp.float32)
    params = init_params(kp, dim, depth)

    y_ref = reference(x, params)

    # High-precision mode: must match the f32 reference tightly (checks the
    # param-folding algebra).
    y_f32 = jax.block_until_ready(
        pre_affine_post_layer_scale(x, params, matmul_dtype=jnp.float32))
    assert y_f32.shape == (N, S, dim), y_f32.shape
    assert bool(jnp.allclose(y_f32, y_ref, atol=1e-3, rtol=1e-3)), "f32 mismatch vs reference"

    # Default fast path: bf16 MXU matmul, f32 accumulate / residual.
    y = jax.block_until_ready(pre_affine_post_layer_scale(x, params))
    assert y.shape == (N, S, dim), y.shape
    assert bool(jnp.allclose(y, y_ref, atol=2e-2, rtol=2e-2)), "bf16 mismatch vs reference"

    print("KERNEL_OK")
</pallas_src>

<mosaic_0001>
module attributes {stable_mosaic.version = 11 : i64} {
  func.func @_block_kernel(%arg0: i32, %arg1: memref<16x128xf32, #tpu.memory_space<vmem>>, %arg2: memref<128x128xf32, #tpu.memory_space<vmem>>, %arg3: memref<1x128xf32, #tpu.memory_space<vmem>>, %arg4: memref<16x128xf32, #tpu.memory_space<vmem>>) attributes {dimension_semantics = [#tpu.dimension_semantics<parallel>], iteration_bounds = array<i64: 2>, scalar_prefetch = 0 : i64, scratch_operands = 0 : i64, tpu.core_type = #tpu.core_type<tc>, window_params = [{transform_indices = @transform_0, window_bounds = array<i64: 16, 128>}, {pipeline_mode = #tpu.pipeline_mode<synchronous>, transform_indices = @transform_1, window_bounds = array<i64: 128, 128>}, {pipeline_mode = #tpu.pipeline_mode<synchronous>, transform_indices = @transform_2, window_bounds = array<i64: 1, 128>}, {transform_indices = @transform_3, window_bounds = array<i64: 16, 128>}]} {
    %c0 = arith.constant 0 : index
    %c0_0 = arith.constant 0 : index
    %0 = vector.load %arg1[%c0, %c0_0] : memref<16x128xf32, #tpu.memory_space<vmem>>, vector<16x128xf32>
    %c0_1 = arith.constant 0 : index
    %c0_2 = arith.constant 0 : index
    %1 = vector.load %arg2[%c0_1, %c0_2] : memref<128x128xf32, #tpu.memory_space<vmem>>, vector<128x128xf32>
    %cst = arith.constant dense<0.000000e+00> : vector<16x128xf32>
    %2 = tpu.matmul %0, %1, %cst {dimension_numbers = #tpu.dot_dimension_numbers<[1], [0], [0], [1], [0, 0, 1, 1], [], []>} : vector<16x128xf32>, vector<128x128xf32>, vector<16x128xf32> -> vector<16x128xf32>
    %c0_3 = arith.constant 0 : index
    %c0_4 = arith.constant 0 : index
    %3 = vector.load %arg3[%c0_3, %c0_4] : memref<1x128xf32, #tpu.memory_space<vmem>>, vector<1x128xf32>
    %4 = vector.broadcast %3 : vector<1x128xf32> to vector<16x128xf32>
    %5 = arith.addf %2, %4 : vector<16x128xf32>
    %6 = arith.addf %5, %0 : vector<16x128xf32>
    %c0_5 = arith.constant 0 : index
    %c0_6 = arith.constant 0 : index
    %7 = vector.load %arg4[%c0_5, %c0_6] : memref<16x128xf32, #tpu.memory_space<vmem>>, vector<16x128xf32>
    tpu.vector_store %arg4[%c0_5, %c0_6], %6 {strides = array<i32>} : memref<16x128xf32, #tpu.memory_space<vmem>>, vector<16x128xf32>,
    return
  }
  func.func @transform_0(%arg0: i32) -> (i32, i32) {
    %c0_i32 = arith.constant 0 : i32
    %c0_i32_0 = arith.constant 0 : i32
    return %arg0, %c0_i32 : i32, i32
  }
  func.func @transform_1(%arg0: i32) -> (i32, i32) {
    %c0_i32 = arith.constant 0 : i32
    %c0_i32_0 = arith.constant 0 : i32
    %c0_i32_1 = arith.constant 0 : i32
    return %c0_i32, %c0_i32_0 : i32, i32
  }
  func.func @transform_2(%arg0: i32) -> (i32, i32) {
    %c0_i32 = arith.constant 0 : i32
    %c0_i32_0 = arith.constant 0 : i32
    %c0_i32_1 = arith.constant 0 : i32
    return %c0_i32, %c0_i32_0 : i32, i32
  }
  func.func @transform_3(%arg0: i32) -> (i32, i32) {
    %c0_i32 = arith.constant 0 : i32
    %c0_i32_0 = arith.constant 0 : i32
    return %arg0, %c0_i32 : i32, i32
  }
}

</mosaic_0001>

<bundles_post_ra>
// kernel: tpu_custom_call.1
= control target key start
LH: loop header
LB: loop body
LE: loop exit
PB: predicated region body
PF: predicated region fallthrough
CT: control target
= control target key end

     0   :  { %8 = vsyncpa [#allocation3], 0  ;;  %s947_s0 = inlined_call_operand.hbm [shape: f32[32,128], index: 0, kind: input, shape index: {}]   ;;  %s948_s1 = inlined_call_operand.hbm [shape: f32[128,128], index: 1, kind: input, shape index: {}]   ;;  %s949_s2 = inlined_call_operand.vmem [shape: f32[1,128], index: 2, kind: input, shape index: {}]   ;;  %s950_s3 = inlined_call_operand.hbm [shape: f32[32,128], index: 3, kind: output, shape index: {}]  }
   0x1   :  { %10 = vsyncpa [#allocation3 + $0x1], 0 }
   0x2   :  { %11 = vsyncpa [#allocation6], 0 }
   0x3   :  { %12 = vsyncpa [#allocation4], 0 }
   0x4   :  { %14 = vsyncpa [#allocation4 + $0x1], 0  ;;  %s729_s12 = smov 0   ;;  %s731_s13 = smov 0  }
   0x5   :  { %s733_s14 = smov 0   ;;  %s735_s15 = smov 0  }
   0x6 LB: > { %s750_s16 = sadd.s32 4294967295, %s700_s15   ;;  %s407_s17 = sadd.s32 4294967294, %s700_s15   ;;  %s700_s15 = sphi %s735_s15, %s970_s15   ;;  %s696_s14 = sphi %s733_s14, %s969_s14   ;;  %s692_s13 = sphi %s731_s13, %s968_s13   ;;  %s688_s12 = sphi %s729_s12, %s967_s12  }
   0x7   : > { %p40_p0 = scmp.ne.s32.totalorder %s692_s13, %s688_s12  ;;  %p951_p1 = scmp.eq.s32.totalorder %s750_s16, 0 }
   0x8   : > { %p112_p3 = scmp.eq.s32.totalorder %s407_s17, 1  ;;  %p408_p5 = scmp.ge.s32.totalorder %s700_s15, 1 }
   0x9   : > { %p759_p4 = por %p951_p1, %p40_p0  ;;  %p119_p7 = scmp.lt.s32.totalorder %s700_s15, 3 }
   0xa   : > { %p764_p6 = por %p112_p3, %p40_p0  ;;  %s702_s21 = smov [#allocation5]  }
   0xb   : > { %s954_s18 = scalar_select %p759_p4, 1, 0 }
   0xc   : > { %s955_s19 = scalar_select %p764_p6, 1, 0 }
   0xd   : > { %p769_p8 = pnand %p408_p5, %p119_p7  ;;  %s131_s22 = sshll.u32 %s702_s21, 4  ;;  %s773_s22 = int_to_ptr.vmem [resolvable:$true] %s131_s22 }
   0xe   : > { %s785_s24 = sadd.s32 1, %s700_s15   ;;  %s27_s25 = sadd.s32 1, %s696_s14 }
   0xf   : > { %s956_s20 = scalar_select %p769_p8, 1, 0 }
  0x10   : > { %p519_p9 = pneg %p769_p8  ;;  %s24_s26 = ssub.s32 %s700_s15, %s785_s24 }
  0x11   : > { %s572_s29 = scalar_lea.hbm %s948_s1, 2048 }
  0x12   : > { %p780_p11 = pnand %p519_p9, %p951_p1  ;;  %p573_p12 = scmp.ne.s32.totalorder %s948_s1, %s572_s29 }
  0x13   : > { %p579_p5 = scmp.lt.u32.totalorder %s572_s29, %s948_s1 }
  0x14   : > { %p574_p13 = pneg %p780_p11 }
  0x16   : > { %p575_p0 = pnand %p574_p13, %p573_p12 }
  0x18   : > { %p576_p3 = pneg %p575_p0 }
  0x1a   : > { %p581_p7 = pnand %p579_p5, %p576_p3 }
  0x1c   : > { %584 = shalt.err (!%p581_p7)
}
  0x1d   : > { %s585_s7 = scalar_lea.vmem %s773_s22, 2048  ;;  %p593_p2 = scmp.lt.s32.totalorder %s773_s22, %s773_s22 }
  0x1e   : > { %p586_p9 = scmp.ne.s32.totalorder %s773_s22, %s585_s7  ;;  %p594_p6 = scmp.lt.s32.totalorder %s585_s7, %s585_s7 }
  0x20   : > { %p588_p10 = pnand %p586_p9, %p574_p13  ;;  %p595_p4 = por %p594_p6, %p593_p2 }
  0x22   : > { %p589_p1 = pneg %p588_p10 }
  0x24   : > { %p596_p8 = pnand %p595_p4, %p589_p1 }
  0x26   : > { %599 = shalt.err (!%p596_p8)
}
  0x27   : > { %s703_s8 = smov 128   ;;  %s704_s9 = smov 8  }
  0x28   : > { %522 = dma.hbm_to_vmem [thread:$0]  (!%p780_p11), %s948_s1, 2048, %s773_s22, [#allocation6], %s703_s8, %s703_s8, %s704_s9  }
  0x29   : > { %p25_p1 = scmp.eq.s32.totalorder %s24_s26, 0  ;;  %p34_p2 = scmp.ne.s32.totalorder %s696_s14, %s692_s13 }
  0x2a   : > { %p35_p4 = scmp.eq.s32.totalorder %s700_s15, 0  ;;  %p532_p6 = scmp.lt.s32.totalorder %s700_s15, 2 }
  0x2b   : > { %s819_s17 = scalar_select %p25_p1, %s696_s14, %s27_s25  }
  0x2c   : > { %p36_p8 = por %p35_p4, %p34_p2  ;;  %p958_p10 = scmp.eq.s32.totalorder %s750_s16, 1 }
  0x2d   : > { %s148_s23 = sand.u32 1, %s696_s14   ;;  %s424_s27 = sshll.u32 %s700_s15, 8 }
  0x2e   : > { %p823_p12 = por %p958_p10, %p34_p2  ;;  %s411_s28 = sshll.u32 %s148_s23, 4 }
  0x2f   : > { %s832_s4 = scalar_lea.hbm %s947_s0, %s424_s27  ;;  %s152_s22 = scalar_lea.vmem [#allocation2], %s411_s28 }
  0x30   : > { %s159_s25 = sshll.u32 %s152_s22, 4  ;;  %p834_p11 = pnand %p532_p6, %p36_p8  ;;  %s838_s25 = int_to_ptr.vmem [resolvable:$true] %s159_s25 }
  0x31   : > { %s840_s5 = scalar_lea.sflag [#allocation3], %s148_s23  ;;  %s600_s6 = scalar_lea.hbm %s832_s4, 256 }
  0x32   : > { %p601_p13 = scmp.ne.s32.totalorder %s832_s4, %s600_s6  ;;  %p602_p0 = pneg %p834_p11 }
  0x33   : > { %s605_s11 = scalar_lea.hbm %s947_s0, 512  ;;  %p606_p7 = scmp.lt.u32.totalorder %s832_s4, %s947_s0 }
  0x34   : > { %p603_p3 = pnand %p602_p0, %p601_p13  ;;  %p607_p9 = scmp.lt.u32.totalorder %s605_s11, %s600_s6 }
  0x35   : > { %p609_p2 = scmp.lt.u32.totalorder %s600_s6, %s832_s4 }
  0x36   : > { %p604_p5 = pneg %p603_p3  ;;  %p608_p1 = por %p607_p9, %p606_p7 }
  0x38   : > { %p610_p4 = por %p609_p2, %p608_p1 }
  0x3a   : > { %p611_p6 = pnand %p610_p4, %p604_p5 }
  0x3c   : > { %614 = shalt.err (!%p611_p6)
}
  0x3d   : > { %s615_s23 = scalar_lea.vmem %s838_s25, 256  ;;  %s705_s29 = smov [#allocation2]  }
  0x3e   : > { %p616_p8 = scmp.ne.s32.totalorder %s838_s25, %s615_s23  ;;  %s620_s30 = sshll.u32 %s705_s29, 4  ;;  %s621_s30 = int_to_ptr.vmem [resolvable:$false] %s620_s30 }
  0x3f   : > { %s622_s22 = scalar_lea.vmem %s621_s30, 512  ;;  %p623_p3 = scmp.lt.s32.totalorder %s838_s25, %s621_s30 }
  0x40   : > { %p618_p10 = pnand %p616_p8, %p602_p0  ;;  %p624_p7 = scmp.lt.s32.totalorder %s622_s22, %s615_s23 }
  0x42   : > { %p619_p13 = pneg %p618_p10  ;;  %p625_p9 = por %p624_p7, %p623_p3 }
  0x44   : > { %p626_p1 = pnand %p625_p9, %p619_p13 }
  0x46   : > { %629 = shalt.err (!%p626_p1)
}
  0x47   : > { %526 = dma.hbm_to_vmem [thread:$0]  (!%p834_p11), %s832_s4, 256, %s838_s25, %s840_s5, %s703_s8, %s703_s8, %s704_s9  }
  0x48   : > { %p961_p0 = scmp.ne.s32.totalorder %s956_s20, 0 }
  0x49   : > { %s874_s6 = sand.u32 (!%p961_p0), 1, %s692_s13   ;;  %p962_p5 = scmp.ne.s32.totalorder (!%p961_p0), %s954_s18, 0 }
  0x4a   : > { %171 = sbr.rel (%p961_p0) target bundleno = 352 (0x160), region = 32  ;;  %s415_s7 = sshll.u32 (!%p961_p0), %s874_s6, 4 }
  0x4b   : > { %s174_s10 = scalar_lea.sflag (!%p961_p0), [#allocation3], %s874_s6  ;;  %s880_s26 = scalar_lea.vmem (!%p961_p0), [#allocation2], %s415_s7 }
  0x51   : > { %675 = dma.done.wait (%p962_p5), %s174_s10, 256  }
  0x52   : > { %677 = vsyncadd (%p962_p5), %s174_s10, 4294967040  ;;  %p963_p11 = scmp.eq.s32.totalorder %s750_s16, 0 }
  0x54   : > { %679 = dma.done.wait (%p963_p11), [#allocation6], 2048   ;;  %p964_p2 = pmov %p963_p11 }
  0x55   : > { %v208_v0 = vld [vmem:[#allocation5] sm:$0xff]  ;;  %v209_v1 = vld [vmem:[#allocation5 + $0x8] sm:$0xff]  ;;  %v210_v2 = vld [vmem:[#allocation5 + $0x10] sm:$0xff]  ;;  %s203_s8 = scalar_lea.vmem [#allocation7], %s415_s7  ;;  %s425_s4 = sshll.u32 %s750_s16, 8 }
  0x56   : > { %681 = vsyncadd (%p964_p2), [#allocation6], 4294965248  ;;  %v479_v3 = vpack.c.bf16 %v209_v1, %v208_v0  ;;  %v211_v4 = vld [vmem:[#allocation5 + $0x18] sm:$0xff]  ;;  %v212_v6 = vld [vmem:[#allocation5 + $0x20] sm:$0xff]  ;;  %s324_s9 = sshll.u32 %s203_s8, 4  ;;  %s903_s11 = scalar_lea.hbm %s950_s3, %s425_s4  ;;  %s898_s9 = int_to_ptr.vmem [resolvable:$true] %s324_s9 }
  0x57   : > { %v483_v5 = vpack.c.bf16 %v211_v4, %v210_v2  ;;  %v213_v7 = vld [vmem:[#allocation5 + $0x28] sm:$0xff]  ;;  %v206_v9 = vld [vmem:[%s880_s26] sm:$0xff]  ;;  %v215_v11 = vld [vmem:[#allocation5 + $0x38] sm:$0xff]  ;;  %s311_s27 = scalar_lea.sflag [#allocation4], %s874_s6  ;;  %s630_s28 = scalar_lea.vmem %s898_s9, 256 }
  0x58   : > { %480 = vmatprep.subr.bf16.mxu0 %v479_v3  ;;  %v487_v8 = vpack.c.bf16 %v213_v7, %v212_v6  ;;  %v214_v10 = vld [vmem:[#allocation5 + $0x30] sm:$0xff]  ;;  %476 = vmatprep.mubr.f32.mxu0 %v206_v9  ;;  %v216_v13 = vld [vmem:[#allocation5 + $0x40] sm:$0xff]  ;;  %v217_v14 = vld [vmem:[#allocation5 + $0x48] sm:$0xff]  ;;  %p631_p4 = scmp.ne.s32.totalorder %s898_s9, %s630_s28  ;;  %s706_s16 = smov [#allocation7]  }
  0x59   : > { %482 = vmatpush3.bf16.msra.mxu0 %v479_v3  ;;  %v491_v12 = vpack.c.bf16 %v215_v11, %v214_v10  ;;  %v495_v15 = vpack.c.bf16 %v217_v14, %v216_v13  ;;  %v218_v16 = vld [vmem:[#allocation5 + $0x50] sm:$0xff]  ;;  %v219_v17 = vld [vmem:[#allocation5 + $0x58] sm:$0xff]  ;;  %v220_v19 = vld [vmem:[#allocation5 + $0x60] sm:$0xff]  ;;  %s634_s23 = sshll.u32 %s706_s16, 4  ;;  %s635_s23 = int_to_ptr.vmem [resolvable:$false] %s634_s23 }
  0x5a   : > { %484 = vmatprep.subr.bf16.mxu0 %v483_v5  ;;  %v499_v18 = vpack.c.bf16 %v219_v17, %v218_v16  ;;  %v221_v20 = vld [vmem:[#allocation5 + $0x68] sm:$0xff]  ;;  %v222_v22 = vld [vmem:[#allocation5 + $0x70] sm:$0xff]  ;;  %v223_v23 = vld [vmem:[#allocation5 + $0x78] sm:$0xff]  ;;  %p632_p6 = pnand %p631_p4, %p823_p12  ;;  %s636_s29 = scalar_lea.vmem %s635_s23, 512 }
  0x5b   : > { %v503_v21 = vpack.c.bf16 %v221_v20, %v220_v19  ;;  %v507_v24 = vpack.c.bf16 %v223_v23, %v222_v22  ;;  %v207_v25 = vld [vmem:[%s880_s26 + $0x8] sm:$0xff]  ;;  %v418_v26 = vld [vmem:[%s949_s2] ss:$0 sm:$0xff]  ;;  %p637_p10 = scmp.lt.s32.totalorder %s898_s9, %s635_s23  ;;  %p638_p13 = scmp.lt.s32.totalorder %s636_s29, %s630_s28 }
  0x5c   : > { %p633_p8 = pneg %p632_p6 }
  0x5d   : > { %486 = vmatpush3.bf16.msra.mxu0 %v483_v5  ;;  %p639_p3 = por %p638_p13, %p637_p10 }
  0x5e   : > { %488 = vmatprep.subr.bf16.mxu0 %v487_v8 }
  0x5f   : > { %p640_p7 = pnand %p639_p3, %p633_p8 }
  0x61   : > { %490 = vmatpush3.bf16.msra.mxu0 %v487_v8 }
  0x62   : > { %492 = vmatprep.subr.bf16.mxu0 %v491_v12 }
  0x65   : > { %494 = vmatpush3.bf16.msra.mxu0 %v491_v12 }
  0x66   : > { %496 = vmatprep.subr.bf16.mxu0 %v495_v15 }
  0x69   : > { %498 = vmatpush3.bf16.msra.mxu0 %v495_v15 }
  0x6a   : > { %500 = vmatprep.subr.bf16.mxu0 %v499_v18 }
  0x6d   : > { %502 = vmatpush3.bf16.msra.mxu0 %v499_v18 }
  0x6e   : > { %504 = vmatprep.subr.bf16.mxu0 %v503_v21 }
  0x71   : > { %506 = vmatpush3.bf16.msra.mxu0 %v503_v21 }
  0x72   : > { %508 = vmatprep.subr.bf16.mxu0 %v507_v24 }
  0x75   : > { %510 = vmatpush3.bf16.msra.mxu0 %v507_v24 }
  0x78   : > { %477 = vmatmul.mubr.f32.vlgmr.msra.gmra.mrb[0].mxu0 %v207_v25 }
 0x14b   : > { %v478_v27 = vpop.f32.mrb[0].mxu0 }
 0x14c   : > { %v303_v28 = vadd.f32 %v478_v27, %v418_v26  ;;  %v297_v29 = vpop.f32.mrb[1].mxu0 }
 0x14d   : > { %v298_v30 = vadd.f32 %v418_v26, %v297_v29 }
 0x14e   : > { %v307_v31 = vadd.f32 %v303_v28, %v207_v25 }
 0x14f   : > { %v306_v32 = vadd.f32 %v298_v30, %v206_v9 }
 0x150   : > { %309 = vst [vmem:[%s203_s8 + $0x8] sm:$0xff] %v307_v31 }
 0x151   : > { %308 = vst [vmem:[%s203_s8] sm:$0xff] %v306_v32 }
 0x152   : > { %643 = shalt.err (!%p640_p7)
}
 0x153   : > { %s644_s30 = scalar_lea.hbm %s903_s11, 256  ;;  %s648_s10 = scalar_lea.hbm %s950_s3, 512 }
 0x154   : > { %p645_p9 = scmp.ne.s32.totalorder %s903_s11, %s644_s30  ;;  %p649_p5 = scmp.lt.u32.totalorder %s903_s11, %s950_s3 }
 0x155   : > { %p650_p11 = scmp.lt.u32.totalorder %s648_s10, %s644_s30  ;;  %p652_p4 = scmp.lt.u32.totalorder %s644_s30, %s903_s11 }
 0x156   : > { %p646_p1 = pnand %p645_p9, %p823_p12 }
 0x157   : > { %p651_p2 = por %p650_p11, %p649_p5 }
 0x158   : > { %p647_p0 = pneg %p646_p1 }
 0x159   : > { %p653_p6 = por %p652_p4, %p651_p2 }
 0x15b   : > { %p654_p8 = pnand %p653_p6, %p647_p0 }
 0x15d   : > { %657 = shalt.err (!%p654_p8)
}
 0x15e   : > { %s707_s20 = smov 128   ;;  %s708_s8 = smov 8  }
 0x15f   : > { %517 = dma.vmem_to_hbm [thread:$0]  (%p823_p12), %s898_s9, 256, %s903_s11, %s311_s27, %s707_s20, %s707_s20, %s708_s8  }
 0x160 PF: > { %s339_s4 = sand.u32 1, %s688_s12   ;;  %p965_p10 = scmp.ne.s32.totalorder %s955_s19, 0 }
 0x161   : > { %p966_p13 = scmp.ge.s32.totalorder %s700_s15, 2  ;;  %s340_s25 = scalar_lea.sflag [#allocation4], %s339_s4 }
 0x163   : > { %p528_p3 = pnand %p966_p13, %p965_p10 }
 0x165   : > { %683 = dma.done.wait (!%p528_p3), %s340_s25, 256  }
 0x166   : > { %685 = vsyncadd (!%p528_p3), %s340_s25, 4294967040  ;;  %p17_p7 = scmp.ge.s32.totalorder %s785_s24, 4   ;;  %s967_s12 = smov %s692_s13 }
 0x167   : > { %s968_s13 = smov %s696_s14  ;;  %s969_s14 = smov %s819_s17 }
 0x168   : > { %s970_s15 = smov %s785_s24  ;;  %19 = sbr.rel (!%p17_p7) target bundleno = 6 (0x6), region = 81 }
 0x16f   :  { %345 = vsyncpa [#allocation3], 1 }
 0x170   :  { %347 = vsyncpa [#allocation3 + $0x1], 1 }
 0x171   :  { %348 = vsyncpa [#allocation6], 1 }
 0x172   :  { %349 = vsyncpa [#allocation4], 1 }
 0x173   :  { %351 = vsyncpa [#allocation4 + $0x1], 1 }

</bundles_post_ra>
